<compile_context>
chip_gen: v7x
topology: tpu7x:2x2x1
jax: 0.10.0
libtpu: 0.0.40
codegen_flags: <defaults>
</compile_context>

<pallas_src>
import functools

import jax
import jax.numpy as jnp
import numpy as np
from jax import lax
from jax.experimental import pallas as pl
from jax.experimental.pallas import tpu as pltpu


def _round_up(n, m):
    return ((n + m - 1) // m) * m


def _rnn_kernel(x_ref, wi_ref, wh_ref, bc_ref, bh_ref, out_ref, xw_ref, h_ref,
                *, t_chunk, b_tile, in_pad, lat_pad, unroll):
    c = pl.program_id(1)  # chunk index along the (sequential) time axis

    # ---- Chunk-wide input projection (no serial dependency) ----------------
    # One big MXU matmul: M = t_chunk * b_tile, K = in_pad. Bias is the
    # host-precombined (b_i + b_h); f32 result staged in VMEM scratch.
    x2d = x_ref[...].reshape(t_chunk * b_tile, in_pad)
    xw = jnp.dot(x2d, wi_ref[...], preferred_element_type=jnp.float32)
    xw = xw + bc_ref[...]                                   # (1, lat_pad) broadcast
    xw_ref[...] = xw.reshape(t_chunk, b_tile, lat_pad)

    @pl.when(c == 0)
    def _():
        # Global t == 0 is the PyTorch `h is None` branch: only b_i applies,
        # so remove the precombined b_h from the first timestep of the first
        # chunk, and zero the carried hidden state (so h @ W_h contributes 0).
        xw_ref[0] = xw_ref[0] - bh_ref[...]
        h_ref[...] = jnp.zeros_like(h_ref)

    # ---- Serial recurrence: only K = lat_pad on the critical path ----------
    def step(t, h):
        # h: (b_tile, lat_pad) bf16, carried in registers across iterations.
        rec = jnp.dot(h, wh_ref[...], preferred_element_type=jnp.float32)
        h_new = jnp.tanh(xw_ref[t] + rec).astype(out_ref.dtype)
        out_ref[t] = h_new                                  # lane-dense bf16 store
        return h_new

    h_last = lax.fori_loop(0, t_chunk, step, h_ref[...], unroll=unroll)
    h_ref[...] = h_last   # persist state across grid steps (scratch survives)


def rnn_forward(x, w_i, b_i, w_h, b_h, *, t_chunk=32, b_tile=None, unroll=8):
    """x: (T, B, input_size); w_i: (input_size, latent); w_h: (latent, latent);
    b_i, b_h: (latent,). Returns (T, B, latent) in x.dtype."""
    T, B, input_size = x.shape
    latent = w_i.shape[1]

    in_pad = _round_up(input_size, 128)       # lane-aligned input features
    lat_pad = _round_up(latent, 128)          # lane-dense hidden/output dim
    if b_tile is None:
        b_tile = min(_round_up(B, 16), 128)   # per-core batch tile
    b_tile = _round_up(b_tile, 16)            # bf16 sublane packing
    b_pad = _round_up(_round_up(B, 16), b_tile)
    n_btiles = b_pad // b_tile

    t_chunk = max(1, min(t_chunk, _round_up(T, 8)))
    t_pad = _round_up(T, t_chunk)
    n_chunks = t_pad // t_chunk
    unroll = max(1, min(unroll, t_chunk))

    # Zero-padded bf16 operands (zeros in padded rows/cols contribute nothing;
    # padded lat columns of W_h/biases are zero so padded h columns stay 0).
    x_p = jnp.zeros((t_pad, b_pad, in_pad), jnp.bfloat16)
    x_p = x_p.at[:T, :B, :input_size].set(x.astype(jnp.bfloat16))
    wi_p = jnp.zeros((in_pad, lat_pad), jnp.bfloat16)
    wi_p = wi_p.at[:input_size, :latent].set(w_i.astype(jnp.bfloat16))
    wh_p = jnp.zeros((lat_pad, lat_pad), jnp.bfloat16)
    wh_p = wh_p.at[:latent, :latent].set(w_h.astype(jnp.bfloat16))
    bc_p = jnp.zeros((1, lat_pad), jnp.float32)
    bc_p = bc_p.at[0, :latent].set((b_i + b_h).astype(jnp.float32))   # combined bias
    bh_p = jnp.zeros((1, lat_pad), jnp.float32)
    bh_p = bh_p.at[0, :latent].set(b_h.astype(jnp.float32))

    kernel = functools.partial(_rnn_kernel, t_chunk=t_chunk, b_tile=b_tile,
                               in_pad=in_pad, lat_pad=lat_pad, unroll=unroll)

    out_p = pl.pallas_call(
        kernel,
        out_shape=jax.ShapeDtypeStruct((t_pad, b_pad, lat_pad), jnp.bfloat16),
        grid_spec=pltpu.PrefetchScalarGridSpec(
            num_scalar_prefetch=0,
            grid=(n_btiles, n_chunks),
            in_specs=[
                # x chunk for this (batch tile, time chunk)
                pl.BlockSpec((t_chunk, b_tile, in_pad), lambda b, c: (c, b, 0)),
                # Weights / biases: constant index_map; at these sizes the
                # default double-buffering costs negligible VMEM, so no
                # pipeline_mode=pl.Buffered(1) / vmem_limit_bytes override.
                pl.BlockSpec((in_pad, lat_pad), lambda b, c: (0, 0)),   # W_i
                pl.BlockSpec((lat_pad, lat_pad), lambda b, c: (0, 0)),  # W_h
                pl.BlockSpec((1, lat_pad), lambda b, c: (0, 0)),        # b_i + b_h
                pl.BlockSpec((1, lat_pad), lambda b, c: (0, 0)),        # b_h
            ],
            out_specs=pl.BlockSpec((t_chunk, b_tile, lat_pad),
                                   lambda b, c: (c, b, 0)),
            scratch_shapes=[
                pltpu.VMEM((t_chunk, b_tile, lat_pad), jnp.float32),    # x@W_i + bias
                pltpu.VMEM((b_tile, lat_pad), jnp.bfloat16),            # carried h
            ],
        ),
        compiler_params=pltpu.CompilerParams(
            # batch tiles are independent (v7x megacore); time chunks carry
            # the recurrence and must run sequentially.
            dimension_semantics=("parallel", "arbitrary")),
    )(x_p, wi_p, wh_p, bc_p, bh_p)

    return out_p[:T, :B, :latent].astype(x.dtype)


def rnn_forward_ref(x, w_i, b_i, w_h, b_h):
    """Pure-JAX f32 reference mirroring the PyTorch loop."""
    T = x.shape[0]
    outs = []
    h = None
    for t in range(T):
        pre = x[t] @ w_i + b_i
        if h is not None:
            pre = pre + h @ w_h + b_h
        h = jnp.tanh(pre)
        outs.append(h)
    return jnp.stack(outs, axis=0)


if __name__ == "__main__":
    # Small, deterministic setup consistent with the module's forward().
    T, B = 8, 4
    input_size, latent_size, output_size = 16, 32, 8  # output_size unused in forward

    key = jax.random.PRNGKey(0)
    kx, kwi, kbi, kwh, kbh = jax.random.split(key, 5)

    x = jax.random.normal(kx, (T, B, input_size), dtype=jnp.float32)
    # PyTorch Linear weights are (out, in); stored pre-transposed as (in, out)
    # so the kernel computes x @ W.
    w_i = jax.random.normal(kwi, (input_size, latent_size), dtype=jnp.float32) * 0.1
    b_i = jax.random.normal(kbi, (latent_size,), dtype=jnp.float32) * 0.1
    w_h = jax.random.normal(kwh, (latent_size, latent_size), dtype=jnp.float32) * 0.1
    b_h = jax.random.normal(kbh, (latent_size,), dtype=jnp.float32) * 0.1

    out = rnn_forward(x, w_i, b_i, w_h, b_h)
    out = jax.block_until_ready(out)

    ref = rnn_forward_ref(x, w_i, b_i, w_h, b_h)
    # bf16 matmul operands + bf16 output (f32 accumulation) -> loosened
    # tolerance vs the f32 reference.
    np.testing.assert_allclose(np.asarray(out), np.asarray(ref), atol=2e-2, rtol=2e-2)

    # TODO(synk): `decode` (Linear + softmax) and the optional one-hot embedding
    # branch are not exercised by forward(); omitted here.
    print("KERNEL_OK")
</pallas_src>

<mosaic_0001>
module attributes {stable_mosaic.version = 11 : i64} {
  func.func @_rnn_kernel(%arg0: i32, %arg1: i32, %arg2: memref<8x16x128xbf16, #tpu.memory_space<vmem>>, %arg3: memref<128x128xbf16, #tpu.memory_space<vmem>>, %arg4: memref<128x128xbf16, #tpu.memory_space<vmem>>, %arg5: memref<1x128xf32, #tpu.memory_space<vmem>>, %arg6: memref<1x128xf32, #tpu.memory_space<vmem>>, %arg7: memref<8x16x128xbf16, #tpu.memory_space<vmem>>, %arg8: memref<8x16x128xf32, #tpu.memory_space<vmem>>, %arg9: memref<16x128xbf16, #tpu.memory_space<vmem>>) attributes {dimension_semantics = [#tpu.dimension_semantics<parallel>, #tpu.dimension_semantics<arbitrary>], iteration_bounds = array<i64: 1, 1>, scalar_prefetch = 0 : i64, scratch_operands = 2 : i64, tpu.core_type = #tpu.core_type<tc>, window_params = [{transform_indices = @transform_0, window_bounds = array<i64: 8, 16, 128>}, {pipeline_mode = #tpu.pipeline_mode<synchronous>, transform_indices = @transform_1, window_bounds = array<i64: 128, 128>}, {pipeline_mode = #tpu.pipeline_mode<synchronous>, transform_indices = @transform_2, window_bounds = array<i64: 128, 128>}, {pipeline_mode = #tpu.pipeline_mode<synchronous>, transform_indices = @transform_3, window_bounds = array<i64: 1, 128>}, {pipeline_mode = #tpu.pipeline_mode<synchronous>, transform_indices = @transform_4, window_bounds = array<i64: 1, 128>}, {transform_indices = @transform_5, window_bounds = array<i64: 8, 16, 128>}]} {
    %c0 = arith.constant 0 : index
    %c0_0 = arith.constant 0 : index
    %c0_1 = arith.constant 0 : index
    %0 = vector.load %arg2[%c0, %c0_0, %c0_1] : memref<8x16x128xbf16, #tpu.memory_space<vmem>>, vector<8x16x128xbf16>
    %1 = vector.shape_cast %0 : vector<8x16x128xbf16> to vector<128x128xbf16>
    %c0_2 = arith.constant 0 : index
    %c0_3 = arith.constant 0 : index
    %2 = vector.load %arg3[%c0_2, %c0_3] : memref<128x128xbf16, #tpu.memory_space<vmem>>, vector<128x128xbf16>
    %cst = arith.constant dense<0.000000e+00> : vector<128x128xf32>
    %3 = tpu.matmul %1, %2, %cst {dimension_numbers = #tpu.dot_dimension_numbers<[1], [0], [0], [1], [0, 0, 1, 1], [], []>} : vector<128x128xbf16>, vector<128x128xbf16>, vector<128x128xf32> -> vector<128x128xf32>
    %c0_4 = arith.constant 0 : index
    %c0_5 = arith.constant 0 : index
    %4 = vector.load %arg5[%c0_4, %c0_5] : memref<1x128xf32, #tpu.memory_space<vmem>>, vector<1x128xf32>
    %5 = vector.broadcast %4 : vector<1x128xf32> to vector<128x128xf32>
    %6 = arith.addf %3, %5 : vector<128x128xf32>
    %7 = vector.shape_cast %6 : vector<128x128xf32> to vector<8x16x128xf32>
    %c0_6 = arith.constant 0 : index
    %c0_7 = arith.constant 0 : index
    %c0_8 = arith.constant 0 : index
    %8 = vector.load %arg8[%c0_6, %c0_7, %c0_8] : memref<8x16x128xf32, #tpu.memory_space<vmem>>, vector<8x16x128xf32>
    tpu.vector_store %arg8[%c0_6, %c0_7, %c0_8], %7 {strides = array<i32>} : memref<8x16x128xf32, #tpu.memory_space<vmem>>, vector<8x16x128xf32>,
    %c0_i32 = arith.constant 0 : i32
    %9 = arith.cmpi eq, %arg1, %c0_i32 : i32
    %10 = arith.extui %9 : i1 to i32
    %c0_i32_9 = arith.constant 0 : i32
    %11 = arith.cmpi ne, %10, %c0_i32_9 : i32
    scf.if %11 {
      %c0_71 = arith.constant 0 : index
      %c0_72 = arith.constant 0 : index
      %c0_73 = arith.constant 0 : index
      %110 = vector.load %arg8[%c0_71, %c0_72, %c0_73] : memref<8x16x128xf32, #tpu.memory_space<vmem>>, vector<1x16x128xf32>
      %111 = vector.shape_cast %110 : vector<1x16x128xf32> to vector<16x128xf32>
      %c0_74 = arith.constant 0 : index
      %c0_75 = arith.constant 0 : index
      %112 = vector.load %arg6[%c0_74, %c0_75] : memref<1x128xf32, #tpu.memory_space<vmem>>, vector<1x128xf32>
      %113 = vector.broadcast %112 : vector<1x128xf32> to vector<16x128xf32>
      %114 = arith.subf %111, %113 : vector<16x128xf32>
      %c0_76 = arith.constant 0 : index
      %c0_77 = arith.constant 0 : index
      %c0_78 = arith.constant 0 : index
      %115 = vector.load %arg8[%c0_76, %c0_77, %c0_78] : memref<8x16x128xf32, #tpu.memory_space<vmem>>, vector<1x16x128xf32>
      %116 = vector.shape_cast %115 : vector<1x16x128xf32> to vector<16x128xf32>
      %117 = vector.shape_cast %114 : vector<16x128xf32> to vector<1x16x128xf32>
      tpu.vector_store %arg8[%c0_76, %c0_77, %c0_78], %117 {strides = array<i32>} : memref<8x16x128xf32, #tpu.memory_space<vmem>>, vector<1x16x128xf32>,
      %cst_79 = arith.constant 0.000000e+00 : bf16
      %118 = vector.broadcast %cst_79 : bf16 to vector<16x128xbf16>
      %c0_80 = arith.constant 0 : index
      %c0_81 = arith.constant 0 : index
      %119 = vector.load %arg9[%c0_80, %c0_81] : memref<16x128xbf16, #tpu.memory_space<vmem>>, vector<16x128xbf16>
      tpu.vector_store %arg9[%c0_80, %c0_81], %118 {strides = array<i32>} : memref<16x128xbf16, #tpu.memory_space<vmem>>, vector<16x128xbf16>,
    } else {
    }
    %c0_10 = arith.constant 0 : index
    %c0_11 = arith.constant 0 : index
    %12 = vector.load %arg9[%c0_10, %c0_11] : memref<16x128xbf16, #tpu.memory_space<vmem>>, vector<16x128xbf16>
    %c0_i32_12 = arith.constant 0 : i32
    %c0_13 = arith.constant 0 : index
    %c0_14 = arith.constant 0 : index
    %13 = vector.load %arg4[%c0_13, %c0_14] : memref<128x128xbf16, #tpu.memory_space<vmem>>, vector<128x128xbf16>
    %cst_15 = arith.constant dense<0.000000e+00> : vector<16x128xf32>
    %14 = tpu.matmul %12, %13, %cst_15 {dimension_numbers = #tpu.dot_dimension_numbers<[1], [0], [0], [1], [0, 0, 1, 1], [], []>} : vector<16x128xbf16>, vector<128x128xbf16>, vector<16x128xf32> -> vector<16x128xf32>
    %15 = arith.index_cast %c0_i32_12 : i32 to index
    %c0_16 = arith.constant 0 : index
    %c0_17 = arith.constant 0 : index
    %16 = vector.load %arg8[%15, %c0_16, %c0_17] : memref<8x16x128xf32, #tpu.memory_space<vmem>>, vector<1x16x128xf32>
    %17 = vector.shape_cast %16 : vector<1x16x128xf32> to vector<16x128xf32>
    %18 = arith.addf %17, %14 : vector<16x128xf32>
    %19 = math.tanh %18 : vector<16x128xf32>
    %20 = arith.truncf %19 : vector<16x128xf32> to vector<16x128xbf16>
    %21 = arith.index_cast %c0_i32_12 : i32 to index
    %c0_18 = arith.constant 0 : index
    %c0_19 = arith.constant 0 : index
    %22 = vector.load %arg7[%21, %c0_18, %c0_19] : memref<8x16x128xbf16, #tpu.memory_space<vmem>>, vector<1x16x128xbf16>
    %23 = vector.shape_cast %22 : vector<1x16x128xbf16> to vector<16x128xbf16>
    %24 = vector.shape_cast %20 : vector<16x128xbf16> to vector<1x16x128xbf16>
    tpu.vector_store %arg7[%21, %c0_18, %c0_19], %24 {strides = array<i32>} : memref<8x16x128xbf16, #tpu.memory_space<vmem>>, vector<1x16x128xbf16>,
    %c1_i32 = arith.constant 1 : i32
    %c0_20 = arith.constant 0 : index
    %c0_21 = arith.constant 0 : index
    %25 = vector.load %arg4[%c0_20, %c0_21] : memref<128x128xbf16, #tpu.memory_space<vmem>>, vector<128x128xbf16>
    %cst_22 = arith.constant dense<0.000000e+00> : vector<16x128xf32>
    %26 = tpu.matmul %20, %25, %cst_22 {dimension_numbers = #tpu.dot_dimension_numbers<[1], [0], [0], [1], [0, 0, 1, 1], [], []>} : vector<16x128xbf16>, vector<128x128xbf16>, vector<16x128xf32> -> vector<16x128xf32>
    %27 = arith.index_cast %c1_i32 : i32 to index
    %c0_23 = arith.constant 0 : index
    %c0_24 = arith.constant 0 : index
    %28 = vector.load %arg8[%27, %c0_23, %c0_24] : memref<8x16x128xf32, #tpu.memory_space<vmem>>, vector<1x16x128xf32>
    %29 = vector.shape_cast %28 : vector<1x16x128xf32> to vector<16x128xf32>
    %30 = arith.addf %29, %26 : vector<16x128xf32>
    %31 = math.tanh %30 : vector<16x128xf32>
    %32 = arith.truncf %31 : vector<16x128xf32> to vector<16x128xbf16>
    %33 = arith.index_cast %c1_i32 : i32 to index
    %c0_25 = arith.constant 0 : index
    %c0_26 = arith.constant 0 : index
    %34 = vector.load %arg7[%33, %c0_25, %c0_26] : memref<8x16x128xbf16, #tpu.memory_space<vmem>>, vector<1x16x128xbf16>
    %35 = vector.shape_cast %34 : vector<1x16x128xbf16> to vector<16x128xbf16>
    %36 = vector.shape_cast %32 : vector<16x128xbf16> to vector<1x16x128xbf16>
    tpu.vector_store %arg7[%33, %c0_25, %c0_26], %36 {strides = array<i32>} : memref<8x16x128xbf16, #tpu.memory_space<vmem>>, vector<1x16x128xbf16>,
    %c2_i32 = arith.constant 2 : i32
    %c0_27 = arith.constant 0 : index
    %c0_28 = arith.constant 0 : index
    %37 = vector.load %arg4[%c0_27, %c0_28] : memref<128x128xbf16, #tpu.memory_space<vmem>>, vector<128x128xbf16>
    %cst_29 = arith.constant dense<0.000000e+00> : vector<16x128xf32>
    %38 = tpu.matmul %32, %37, %cst_29 {dimension_numbers = #tpu.dot_dimension_numbers<[1], [0], [0], [1], [0, 0, 1, 1], [], []>} : vector<16x128xbf16>, vector<128x128xbf16>, vector<16x128xf32> -> vector<16x128xf32>
    %39 = arith.index_cast %c2_i32 : i32 to index
    %c0_30 = arith.constant 0 : index
    %c0_31 = arith.constant 0 : index
    %40 = vector.load %arg8[%39, %c0_30, %c0_31] : memref<8x16x128xf32, #tpu.memory_space<vmem>>, vector<1x16x128xf32>
    %41 = vector.shape_cast %40 : vector<1x16x128xf32> to vector<16x128xf32>
    %42 = arith.addf %41, %38 : vector<16x128xf32>
    %43 = math.tanh %42 : vector<16x128xf32>
    %44 = arith.truncf %43 : vector<16x128xf32> to vector<16x128xbf16>
    %45 = arith.index_cast %c2_i32 : i32 to index
    %c0_32 = arith.constant 0 : index
    %c0_33 = arith.constant 0 : index
    %46 = vector.load %arg7[%45, %c0_32, %c0_33] : memref<8x16x128xbf16, #tpu.memory_space<vmem>>, vector<1x16x128xbf16>
    %47 = vector.shape_cast %46 : vector<1x16x128xbf16> to vector<16x128xbf16>
    %48 = vector.shape_cast %44 : vector<16x128xbf16> to vector<1x16x128xbf16>
    tpu.vector_store %arg7[%45, %c0_32, %c0_33], %48 {strides = array<i32>} : memref<8x16x128xbf16, #tpu.memory_space<vmem>>, vector<1x16x128xbf16>,
    %c3_i32 = arith.constant 3 : i32
    %c0_34 = arith.constant 0 : index
    %c0_35 = arith.constant 0 : index
    %49 = vector.load %arg4[%c0_34, %c0_35] : memref<128x128xbf16, #tpu.memory_space<vmem>>, vector<128x128xbf16>
    %cst_36 = arith.constant dense<0.000000e+00> : vector<16x128xf32>
    %50 = tpu.matmul %44, %49, %cst_36 {dimension_numbers = #tpu.dot_dimension_numbers<[1], [0], [0], [1], [0, 0, 1, 1], [], []>} : vector<16x128xbf16>, vector<128x128xbf16>, vector<16x128xf32> -> vector<16x128xf32>
    %51 = arith.index_cast %c3_i32 : i32 to index
    %c0_37 = arith.constant 0 : index
    %c0_38 = arith.constant 0 : index
    %52 = vector.load %arg8[%51, %c0_37, %c0_38] : memref<8x16x128xf32, #tpu.memory_space<vmem>>, vector<1x16x128xf32>
    %53 = vector.shape_cast %52 : vector<1x16x128xf32> to vector<16x128xf32>
    %54 = arith.addf %53, %50 : vector<16x128xf32>
    %55 = math.tanh %54 : vector<16x128xf32>
    %56 = arith.truncf %55 : vector<16x128xf32> to vector<16x128xbf16>
    %57 = arith.index_cast %c3_i32 : i32 to index
    %c0_39 = arith.constant 0 : index
    %c0_40 = arith.constant 0 : index
    %58 = vector.load %arg7[%57, %c0_39, %c0_40] : memref<8x16x128xbf16, #tpu.memory_space<vmem>>, vector<1x16x128xbf16>
    %59 = vector.shape_cast %58 : vector<1x16x128xbf16> to vector<16x128xbf16>
    %60 = vector.shape_cast %56 : vector<16x128xbf16> to vector<1x16x128xbf16>
    tpu.vector_store %arg7[%57, %c0_39, %c0_40], %60 {strides = array<i32>} : memref<8x16x128xbf16, #tpu.memory_space<vmem>>, vector<1x16x128xbf16>,
    %c4_i32 = arith.constant 4 : i32
    %c0_41 = arith.constant 0 : index
    %c0_42 = arith.constant 0 : index
    %61 = vector.load %arg4[%c0_41, %c0_42] : memref<128x128xbf16, #tpu.memory_space<vmem>>, vector<128x128xbf16>
    %cst_43 = arith.constant dense<0.000000e+00> : vector<16x128xf32>
    %62 = tpu.matmul %56, %61, %cst_43 {dimension_numbers = #tpu.dot_dimension_numbers<[1], [0], [0], [1], [0, 0, 1, 1], [], []>} : vector<16x128xbf16>, vector<128x128xbf16>, vector<16x128xf32> -> vector<16x128xf32>
    %63 = arith.index_cast %c4_i32 : i32 to index
    %c0_44 = arith.constant 0 : index
    %c0_45 = arith.constant 0 : index
    %64 = vector.load %arg8[%63, %c0_44, %c0_45] : memref<8x16x128xf32, #tpu.memory_space<vmem>>, vector<1x16x128xf32>
    %65 = vector.shape_cast %64 : vector<1x16x128xf32> to vector<16x128xf32>
    %66 = arith.addf %65, %62 : vector<16x128xf32>
    %67 = math.tanh %66 : vector<16x128xf32>
    %68 = arith.truncf %67 : vector<16x128xf32> to vector<16x128xbf16>
    %69 = arith.index_cast %c4_i32 : i32 to index
    %c0_46 = arith.constant 0 : index
    %c0_47 = arith.constant 0 : index
    %70 = vector.load %arg7[%69, %c0_46, %c0_47] : memref<8x16x128xbf16, #tpu.memory_space<vmem>>, vector<1x16x128xbf16>
    %71 = vector.shape_cast %70 : vector<1x16x128xbf16> to vector<16x128xbf16>
    %72 = vector.shape_cast %68 : vector<16x128xbf16> to vector<1x16x128xbf16>
    tpu.vector_store %arg7[%69, %c0_46, %c0_47], %72 {strides = array<i32>} : memref<8x16x128xbf16, #tpu.memory_space<vmem>>, vector<1x16x128xbf16>,
    %c5_i32 = arith.constant 5 : i32
    %c0_48 = arith.constant 0 : index
    %c0_49 = arith.constant 0 : index
    %73 = vector.load %arg4[%c0_48, %c0_49] : memref<128x128xbf16, #tpu.memory_space<vmem>>, vector<128x128xbf16>
    %cst_50 = arith.constant dense<0.000000e+00> : vector<16x128xf32>
    %74 = tpu.matmul %68, %73, %cst_50 {dimension_numbers = #tpu.dot_dimension_numbers<[1], [0], [0], [1], [0, 0, 1, 1], [], []>} : vector<16x128xbf16>, vector<128x128xbf16>, vector<16x128xf32> -> vector<16x128xf32>
    %75 = arith.index_cast %c5_i32 : i32 to index
    %c0_51 = arith.constant 0 : index
    %c0_52 = arith.constant 0 : index
    %76 = vector.load %arg8[%75, %c0_51, %c0_52] : memref<8x16x128xf32, #tpu.memory_space<vmem>>, vector<1x16x128xf32>
    %77 = vector.shape_cast %76 : vector<1x16x128xf32> to vector<16x128xf32>
    %78 = arith.addf %77, %74 : vector<16x128xf32>
    %79 = math.tanh %78 : vector<16x128xf32>
    %80 = arith.truncf %79 : vector<16x128xf32> to vector<16x128xbf16>
    %81 = arith.index_cast %c5_i32 : i32 to index
    %c0_53 = arith.constant 0 : index
    %c0_54 = arith.constant 0 : index
    %82 = vector.load %arg7[%81, %c0_53, %c0_54] : memref<8x16x128xbf16, #tpu.memory_space<vmem>>, vector<1x16x128xbf16>
    %83 = vector.shape_cast %82 : vector<1x16x128xbf16> to vector<16x128xbf16>
    %84 = vector.shape_cast %80 : vector<16x128xbf16> to vector<1x16x128xbf16>
    tpu.vector_store %arg7[%81, %c0_53, %c0_54], %84 {strides = array<i32>} : memref<8x16x128xbf16, #tpu.memory_space<vmem>>, vector<1x16x128xbf16>,
    %c6_i32 = arith.constant 6 : i32
    %c0_55 = arith.constant 0 : index
    %c0_56 = arith.constant 0 : index
    %85 = vector.load %arg4[%c0_55, %c0_56] : memref<128x128xbf16, #tpu.memory_space<vmem>>, vector<128x128xbf16>
    %cst_57 = arith.constant dense<0.000000e+00> : vector<16x128xf32>
    %86 = tpu.matmul %80, %85, %cst_57 {dimension_numbers = #tpu.dot_dimension_numbers<[1], [0], [0], [1], [0, 0, 1, 1], [], []>} : vector<16x128xbf16>, vector<128x128xbf16>, vector<16x128xf32> -> vector<16x128xf32>
    %87 = arith.index_cast %c6_i32 : i32 to index
    %c0_58 = arith.constant 0 : index
    %c0_59 = arith.constant 0 : index
    %88 = vector.load %arg8[%87, %c0_58, %c0_59] : memref<8x16x128xf32, #tpu.memory_space<vmem>>, vector<1x16x128xf32>
    %89 = vector.shape_cast %88 : vector<1x16x128xf32> to vector<16x128xf32>
    %90 = arith.addf %89, %86 : vector<16x128xf32>
    %91 = math.tanh %90 : vector<16x128xf32>
    %92 = arith.truncf %91 : vector<16x128xf32> to vector<16x128xbf16>
    %93 = arith.index_cast %c6_i32 : i32 to index
    %c0_60 = arith.constant 0 : index
    %c0_61 = arith.constant 0 : index
    %94 = vector.load %arg7[%93, %c0_60, %c0_61] : memref<8x16x128xbf16, #tpu.memory_space<vmem>>, vector<1x16x128xbf16>
    %95 = vector.shape_cast %94 : vector<1x16x128xbf16> to vector<16x128xbf16>
    %96 = vector.shape_cast %92 : vector<16x128xbf16> to vector<1x16x128xbf16>
    tpu.vector_store %arg7[%93, %c0_60, %c0_61], %96 {strides = array<i32>} : memref<8x16x128xbf16, #tpu.memory_space<vmem>>, vector<1x16x128xbf16>,
    %c7_i32 = arith.constant 7 : i32
    %c0_62 = arith.constant 0 : index
    %c0_63 = arith.constant 0 : index
    %97 = vector.load %arg4[%c0_62, %c0_63] : memref<128x128xbf16, #tpu.memory_space<vmem>>, vector<128x128xbf16>
    %cst_64 = arith.constant dense<0.000000e+00> : vector<16x128xf32>
    %98 = tpu.matmul %92, %97, %cst_64 {dimension_numbers = #tpu.dot_dimension_numbers<[1], [0], [0], [1], [0, 0, 1, 1], [], []>} : vector<16x128xbf16>, vector<128x128xbf16>, vector<16x128xf32> -> vector<16x128xf32>
    %99 = arith.index_cast %c7_i32 : i32 to index
    %c0_65 = arith.constant 0 : index
    %c0_66 = arith.constant 0 : index
    %100 = vector.load %arg8[%99, %c0_65, %c0_66] : memref<8x16x128xf32, #tpu.memory_space<vmem>>, vector<1x16x128xf32>
    %101 = vector.shape_cast %100 : vector<1x16x128xf32> to vector<16x128xf32>
    %102 = arith.addf %101, %98 : vector<16x128xf32>
    %103 = math.tanh %102 : vector<16x128xf32>
    %104 = arith.truncf %103 : vector<16x128xf32> to vector<16x128xbf16>
    %105 = arith.index_cast %c7_i32 : i32 to index
    %c0_67 = arith.constant 0 : index
    %c0_68 = arith.constant 0 : index
    %106 = vector.load %arg7[%105, %c0_67, %c0_68] : memref<8x16x128xbf16, #tpu.memory_space<vmem>>, vector<1x16x128xbf16>
    %107 = vector.shape_cast %106 : vector<1x16x128xbf16> to vector<16x128xbf16>
    %108 = vector.shape_cast %104 : vector<16x128xbf16> to vector<1x16x128xbf16>
    tpu.vector_store %arg7[%105, %c0_67, %c0_68], %108 {strides = array<i32>} : memref<8x16x128xbf16, #tpu.memory_space<vmem>>, vector<1x16x128xbf16>,
    %c8_i32 = arith.constant 8 : i32
    %c0_69 = arith.constant 0 : index
    %c0_70 = arith.constant 0 : index
    %109 = vector.load %arg9[%c0_69, %c0_70] : memref<16x128xbf16, #tpu.memory_space<vmem>>, vector<16x128xbf16>
    tpu.vector_store %arg9[%c0_69, %c0_70], %104 {strides = array<i32>} : memref<16x128xbf16, #tpu.memory_space<vmem>>, vector<16x128xbf16>,
    return
  }
  func.func @transform_0(%arg0: i32, %arg1: i32) -> (i32, i32, i32) {
    %c0_i32 = arith.constant 0 : i32
    %c0_i32_0 = arith.constant 0 : i32
    return %arg1, %arg0, %c0_i32 : i32, i32, i32
  }
  func.func @transform_1(%arg0: i32, %arg1: i32) -> (i32, i32) {
    %c0_i32 = arith.constant 0 : i32
    %c0_i32_0 = arith.constant 0 : i32
    %c0_i32_1 = arith.constant 0 : i32
    return %c0_i32, %c0_i32_0 : i32, i32
  }
  func.func @transform_2(%arg0: i32, %arg1: i32) -> (i32, i32) {
    %c0_i32 = arith.constant 0 : i32
    %c0_i32_0 = arith.constant 0 : i32
    %c0_i32_1 = arith.constant 0 : i32
    return %c0_i32, %c0_i32_0 : i32, i32
  }
  func.func @transform_3(%arg0: i32, %arg1: i32) -> (i32, i32) {
    %c0_i32 = arith.constant 0 : i32
    %c0_i32_0 = arith.constant 0 : i32
    %c0_i32_1 = arith.constant 0 : i32
    return %c0_i32, %c0_i32_0 : i32, i32
  }
  func.func @transform_4(%arg0: i32, %arg1: i32) -> (i32, i32) {
    %c0_i32 = arith.constant 0 : i32
    %c0_i32_0 = arith.constant 0 : i32
    %c0_i32_1 = arith.constant 0 : i32
    return %c0_i32, %c0_i32_0 : i32, i32
  }
  func.func @transform_5(%arg0: i32, %arg1: i32) -> (i32, i32, i32) {
    %c0_i32 = arith.constant 0 : i32
    %c0_i32_0 = arith.constant 0 : i32
    return %arg1, %arg0, %c0_i32 : i32, i32, i32
  }
}

</mosaic_0001>

<bundles_post_ra>
// kernel: tpu_custom_call.1
= control target key start
LH: loop header
LB: loop body
LE: loop exit
PB: predicated region body
PF: predicated region fallthrough
CT: control target
= control target key end

     0   :  { %10 = vsyncpa [#allocation5], 0  ;;  %s2226_s0 = inlined_call_operand.hbm [shape: bf16[8,16,128], index: 0, kind: input, shape index: {}]   ;;  %s2227_s1 = inlined_call_operand.hbm [shape: bf16[128,128], index: 1, kind: input, shape index: {}]   ;;  %s2228_s2 = inlined_call_operand.hbm [shape: bf16[128,128], index: 2, kind: input, shape index: {}]   ;;  %s2229_s3 = inlined_call_operand.vmem [shape: f32[1,128], index: 3, kind: input, shape index: {}]   ;;  %s2230_s4 = inlined_call_operand.vmem [shape: f32[1,128], index: 4, kind: input, shape index: {}]   ;;  %s2231_s5 = inlined_call_operand.hbm [shape: bf16[8,16,128], index: 5, kind: output, shape index: {}]  }
   0x1   :  { %11 = vsyncpa [#allocation8], 0 }
   0x2   :  { %12 = vsyncpa [#allocation6], 0  ;;  %s1980_s18 = smov [#allocation7]   ;;  %s1981_s20 = smov [#allocation4]  }
   0x3   :  { %s30_s19 = sshll.u32 %s1980_s18, 4  ;;  %s18_s21 = sshll.u32 %s1981_s20, 4  ;;  %s31_s19 = int_to_ptr.vmem [resolvable:$true] %s30_s19  ;;  %s2019_s21 = int_to_ptr.vmem [resolvable:$true] %s18_s21 }
   0x4   :  { %s1886_s24 = scalar_lea.hbm %s2227_s1, 1024 }
   0x5   :  { %p1887_p0 = scmp.ne.s32.totalorder %s2227_s1, %s1886_s24  ;;  %p1890_p1 = scmp.lt.u32.totalorder %s1886_s24, %s2227_s1 }
   0x7   :  { %p1892_p2 = pnand %p1890_p1, %p1887_p0 }
   0x9   :  { %1895 = shalt.err (!%p1892_p2)
}
   0xa   :  { %s1896_s29 = scalar_lea.vmem %s31_s19, 1024  ;;  %p1901_p4 = scmp.lt.s32.totalorder %s31_s19, %s31_s19 }
   0xb   :  { %p1897_p3 = scmp.ne.s32.totalorder %s31_s19, %s1896_s29  ;;  %p1902_p5 = scmp.lt.s32.totalorder %s1896_s29, %s1896_s29 }
   0xd   :  { %p1903_p6 = por %p1902_p5, %p1901_p4 }
   0xf   :  { %p1904_p7 = pnand %p1903_p6, %p1897_p3 }
  0x11   :  { %1907 = shalt.err (!%p1904_p7)
}
  0x12   :  { %s1982_s30 = smov 64   ;;  %s1983_s6 = smov 4  }
  0x13   :  { %36 = dma.hbm_to_vmem [thread:$0]  %s2227_s1, 1024, %s31_s19, [#allocation8], %s1982_s30, %s1982_s30, %s1983_s6  }
  0x14   :  { %s1908_s11 = scalar_lea.hbm %s2226_s0, 1024 }
  0x15   :  { %p1909_p8 = scmp.ne.s32.totalorder %s2226_s0, %s1908_s11  ;;  %p1912_p9 = scmp.lt.u32.totalorder %s1908_s11, %s2226_s0 }
  0x17   :  { %p1914_p10 = pnand %p1912_p9, %p1909_p8 }
  0x19   :  { %1917 = shalt.err (!%p1914_p10)
}
  0x1a   :  { %s1918_s16 = scalar_lea.vmem %s2019_s21, 1024  ;;  %p1923_p12 = scmp.lt.s32.totalorder %s2019_s21, %s2019_s21 }
  0x1b   :  { %p1919_p11 = scmp.ne.s32.totalorder %s2019_s21, %s1918_s16  ;;  %p1924_p13 = scmp.lt.s32.totalorder %s1918_s16, %s1918_s16 }
  0x1d   :  { %p1925_p0 = por %p1924_p13, %p1923_p12 }
  0x1f   :  { %p1926_p1 = pnand %p1925_p0, %p1919_p11 }
  0x21   :  { %1929 = shalt.err (!%p1926_p1)
}
  0x22   :  { %24 = dma.hbm_to_vmem [thread:$0]  %s2226_s0, 1024, %s2019_s21, [#allocation5], %s1982_s30, %s1982_s30, %s1983_s6  }
  0x23   :  { %s1984_s18 = smov [#allocation9]   ;;  %s1930_s23 = scalar_lea.hbm %s2228_s2, 1024 }
  0x24   :  { %s42_s19 = sshll.u32 %s1984_s18, 4  ;;  %p1931_p2 = scmp.ne.s32.totalorder %s2228_s2, %s1930_s23  ;;  %s43_s19 = int_to_ptr.vmem [resolvable:$true] %s42_s19 }
  0x25   :  { %p1934_p3 = scmp.lt.u32.totalorder %s1930_s23, %s2228_s2 }
  0x27   :  { %p1936_p4 = pnand %p1934_p3, %p1931_p2 }
  0x29   :  { %1939 = shalt.err (!%p1936_p4)
}
  0x2a   :  { %s1940_s28 = scalar_lea.vmem %s43_s19, 1024  ;;  %p1945_p6 = scmp.lt.s32.totalorder %s43_s19, %s43_s19 }
  0x2b   :  { %p1941_p5 = scmp.ne.s32.totalorder %s43_s19, %s1940_s28  ;;  %p1946_p7 = scmp.lt.s32.totalorder %s1940_s28, %s1940_s28 }
  0x2d   :  { %p1947_p8 = por %p1946_p7, %p1945_p6 }
  0x2f   :  { %p1948_p9 = pnand %p1947_p8, %p1941_p5 }
  0x31   :  { %1951 = shalt.err (!%p1948_p9)
}
  0x32   :  { %48 = dma.hbm_to_vmem [thread:$0]  %s2228_s2, 1024, %s43_s19, [#allocation8], %s1982_s30, %s1982_s30, %s1983_s6  }
  0x33   :  { %1974 = dma.done.wait [#allocation5], 1024  }
  0x34   :  { %1975 = vsyncadd [#allocation5], 4294966272 }
  0x35   :  { %1976 = dma.done.wait [#allocation8], 2048  }
  0x36   :  { %1977 = vsyncadd [#allocation8], 4294965248  ;;  %v1985_v0 = vmov 0.0   ;;  %vm1986_vm0 = vmmov 0   ;;  %v1774_v1 = vld [vmem:[#allocation7] sm:$0xff]   ;;  %v1776_v3 = vld [vmem:[#allocation7 + $0x8] sm:$0xff]  }
  0x37   :  { %1605 = vmatprep.subr.bf16.mxu1 %v1985_v0  ;;  %1621 = vmatprep.mubr.msk.bf16.mxu1 %vm1986_vm0, %v1985_v0  ;;  %v1775_v2 = vld [vmem:[#allocation9] sm:$0xff]   ;;  %v1777_v4 = vld [vmem:[#allocation9 + $0x8] sm:$0xff]   ;;  %v1778_v5 = vld [vmem:[#allocation7 + $0x10] sm:$0xff]   ;;  %v1987_v22 = vmov 0  }
  0x38   :  { %1573 = vmatprep.subr.bf16.mxu0 %v1774_v1  ;;  %1606 = vmatpush3.bf16.msra.mxu1 %v1775_v2  ;;  %v1779_v6 = vld [vmem:[#allocation9 + $0x10] sm:$0xff]   ;;  %v1780_v7 = vld [vmem:[#allocation7 + $0x18] sm:$0xff]   ;;  %v1782_v9 = vld [vmem:[#allocation7 + $0x20] sm:$0xff]  }
  0x39   :  { %1574 = vmatpush3.bf16.msra.mxu0 %v1774_v1  ;;  %1607 = vmatprep.subr.bf16.mxu1 %v1985_v0  ;;  %v1781_v8 = vld [vmem:[#allocation9 + $0x18] sm:$0xff]   ;;  %v1783_v10 = vld [vmem:[#allocation9 + $0x20] sm:$0xff]   ;;  %v1784_v12 = vld [vmem:[#allocation7 + $0x28] sm:$0xff]  }
  0x3a   :  { %1575 = vmatprep.subr.bf16.mxu0 %v1776_v3  ;;  %v1789_v11 = vld [vmem:[#allocation4] sm:$0xff]   ;;  %v1785_v13 = vld [vmem:[#allocation9 + $0x28] sm:$0xff]   ;;  %v1786_v14 = vld [vmem:[#allocation7 + $0x30] sm:$0xff]  }
  0x3b   :  { %1589 = vmatprep.mubr.bf16.mxu0 %v1789_v11  ;;  %v1787_v15 = vld [vmem:[#allocation9 + $0x30] sm:$0xff]   ;;  %v1788_v16 = vld [vmem:[#allocation7 + $0x38] sm:$0xff]   ;;  %v1791_v18 = vld [vmem:[#allocation4 + $0x8] sm:$0xff]  }
  0x3c   :  { %1608 = vmatpush3.bf16.msra.mxu1 %v1777_v4  ;;  %v1790_v17 = vld [vmem:[#allocation9 + $0x38] sm:$0xff]   ;;  %v1792_v19 = vld [vmem:[#allocation9] sm:$0xff]   ;;  %v1793_v20 = vld [vmem:[#allocation4 + $0x10] sm:$0xff]  }
  0x3d   :  { %1576 = vmatpush3.bf16.msra.mxu0 %v1776_v3  ;;  %1609 = vmatprep.subr.bf16.mxu1 %v1985_v0  ;;  %v1794_v21 = vld [vmem:[#allocation9 + $0x8] sm:$0xff]   ;;  %v1795_v23 = vld [vmem:[#allocation4 + $0x18] sm:$0xff]   ;;  %v1796_v24 = vld [vmem:[#allocation9 + $0x10] sm:$0xff]  }
  0x3e   :  { %1577 = vmatprep.subr.bf16.mxu0 %v1778_v5  ;;  %v1797_v25 = vld [vmem:[#allocation4 + $0x20] sm:$0xff]   ;;  %v1798_v26 = vld [vmem:[#allocation9 + $0x18] sm:$0xff]   ;;  %v1799_v27 = vld [vmem:[#allocation4 + $0x28] sm:$0xff]  }
  0x3f   :  { %v1800_v28 = vld [vmem:[#allocation9 + $0x20] sm:$0xff]   ;;  %v1801_v29 = vld [vmem:[#allocation4 + $0x30] sm:$0xff]   ;;  %v1802_v30 = vld [vmem:[#allocation9 + $0x28] sm:$0xff]  }
  0x40   :  { %1610 = vmatpush3.bf16.msra.mxu1 %v1779_v6  ;;  %v1803_v31 = vld [vmem:[#allocation4 + $0x38] sm:$0xff]   ;;  %v1804_v32 = vld [vmem:[#allocation9 + $0x30] sm:$0xff]   ;;  %v1806_v34 = vld [vmem:[#allocation9] sm:$0xff]  }
  0x41   :  { %1578 = vmatpush3.bf16.msra.mxu0 %v1778_v5  ;;  %1611 = vmatprep.subr.bf16.mxu1 %v1985_v0  ;;  %v1805_v33 = vld [vmem:[#allocation9 + $0x38] sm:$0xff]   ;;  %v1807_v35 = vld [vmem:[#allocation9 + $0x8] sm:$0xff]   ;;  %v1808_v36 = vld [vmem:[#allocation9 + $0x10] sm:$0xff]  }
  0x42   :  { %1579 = vmatprep.subr.bf16.mxu0 %v1780_v7  ;;  %v1809_v37 = vld [vmem:[#allocation9 + $0x18] sm:$0xff]   ;;  %v2102_v38 = vld [vmem:[%s2229_s3] ss:$0 sm:$0xff]  ;;  %v1815_v11 = vld [vmem:[#allocation9 + $0x8] sm:$0xff]   ;;  %s1988_s3 = smov [#allocation10]  }
  0x43   :  { %v1348_v42 = vld [vmem:[%s2230_s4] ss:$0 sm:$0xff]  ;;  %s1318_s4 = sshll.u32 %s1988_s3, 4  ;;  %s1319_s4 = int_to_ptr.vmem [resolvable:$true] %s1318_s4 }
  0x44   :  { %1612 = vmatpush3.bf16.msra.mxu1 %v1781_v8  ;;  %v1810_v6 = vld [vmem:[#allocation9 + $0x20] sm:$0xff]   ;;  %v1812_v8 = vld [vmem:[#allocation9 + $0x30] sm:$0xff]   ;;  %s1952_s9 = scalar_lea.vmem %s1319_s4, 1024  ;;  %p1957_p11 = scmp.lt.s32.totalorder %s1319_s4, %s1319_s4 }
  0x45   :  { %1580 = vmatpush3.bf16.msra.mxu0 %v1780_v7  ;;  %1613 = vmatprep.subr.bf16.mxu1 %v1985_v0  ;;  %v1811_v7 = vld [vmem:[#allocation9 + $0x28] sm:$0xff]   ;;  %p1953_p10 = scmp.ne.s32.totalorder %s1319_s4, %s1952_s9  ;;  %p1958_p12 = scmp.lt.s32.totalorder %s1952_s9, %s1952_s9 }
  0x46   :  { %1581 = vmatprep.subr.bf16.mxu0 %v1782_v9 }
  0x47   :  { %p1959_p13 = por %p1958_p12, %p1957_p11 }
  0x48   :  { %1614 = vmatpush3.bf16.msra.mxu1 %v1783_v10  ;;  %v1814_v10 = vld [vmem:[#allocation9] sm:$0xff]  }
  0x49   :  { %1582 = vmatpush3.bf16.msra.mxu0 %v1782_v9  ;;  %1615 = vmatprep.subr.bf16.mxu1 %v1985_v0  ;;  %v1813_v9 = vld [vmem:[#allocation9 + $0x38] sm:$0xff]   ;;  %p1960_p0 = pnand %p1959_p13, %p1953_p10 }
  0x4a   :  { %1583 = vmatprep.subr.bf16.mxu0 %v1784_v12 }
  0x4c   :  { %1616 = vmatpush3.bf16.msra.mxu1 %v1785_v13  ;;  %v1817_v13 = vld [vmem:[#allocation9 + $0x18] sm:$0xff]  }
  0x4d   :  { %1584 = vmatpush3.bf16.msra.mxu0 %v1784_v12  ;;  %1617 = vmatprep.subr.bf16.mxu1 %v1985_v0  ;;  %v1816_v12 = vld [vmem:[#allocation9 + $0x10] sm:$0xff]  }
  0x4e   :  { %1585 = vmatprep.subr.bf16.mxu0 %v1786_v14 }
  0x50   :  { %1618 = vmatpush3.bf16.msra.mxu1 %v1787_v15 }
  0x51   :  { %1586 = vmatpush3.bf16.msra.mxu0 %v1786_v14  ;;  %1619 = vmatprep.subr.bf16.mxu1 %v1985_v0 }
  0x52   :  { %1587 = vmatprep.subr.bf16.mxu0 %v1788_v16 }
  0x54   :  { %1620 = vmatpush3.bf16.msra.mxu1 %v1790_v17 }
  0x55   :  { %1588 = vmatpush3.bf16.msra.mxu0 %v1788_v16  ;;  %1645 = vmatprep.subr.bf16.mxu1 %v1985_v0 }
  0x56   :  { %1625 = vmatprep.subr.bf16.mxu0 %v1985_v0 }
  0x57   :  { %1622 = vmatmul.mubr.bf16.vlgmr.msra.gmra.mrb[0].mxu1 %v1987_v22 }
  0x58   :  { %1590 = vmatmul.mubr.bf16.vlgmr.msra.gmra.mrb[0].mxu0 %v1791_v18  ;;  %1661 = vmatprep.mubr.msk.bf16.mxu1 %vm1986_vm0, %v1985_v0 }
  0x59   :  { %1626 = vmatpush3.bf16.msra.mxu0 %v1792_v19  ;;  %1593 = vmatprep.mubr.bf16.mxu0 %v1793_v20 }
  0x5a   :  { %1627 = vmatprep.subr.bf16.mxu0 %v1985_v0  ;;  %1646 = vmatpush3.bf16.msra.mxu1 %v1806_v34 }
  0x5b   :  { %1647 = vmatprep.subr.bf16.mxu1 %v1985_v0 }
  0x5d   :  { %1628 = vmatpush3.bf16.msra.mxu0 %v1794_v21 }
  0x5e   :  { %1629 = vmatprep.subr.bf16.mxu0 %v1985_v0  ;;  %1648 = vmatpush3.bf16.msra.mxu1 %v1807_v35 }
  0x5f   :  { %1649 = vmatprep.subr.bf16.mxu1 %v1985_v0 }
  0x60   :  { %1594 = vmatmul.mubr.bf16.gmra.mrb[4].mxu0 %v1795_v23 }
  0x61   :  { %1630 = vmatpush3.bf16.msra.mxu0 %v1796_v24  ;;  %1597 = vmatprep.mubr.bf16.mxu0 %v1797_v25  ;;  %v1818_v25 = vld [vmem:[#allocation9 + $0x20] sm:$0xff]  }
  0x62   :  { %1631 = vmatprep.subr.bf16.mxu0 %v1985_v0  ;;  %1650 = vmatpush3.bf16.msra.mxu1 %v1808_v36 }
  0x63   :  { %1651 = vmatprep.subr.bf16.mxu1 %v1985_v0 }
  0x65   :  { %1632 = vmatpush3.bf16.msra.mxu0 %v1798_v26  ;;  %v1819_v26 = vld [vmem:[#allocation9 + $0x28] sm:$0xff]  }
  0x66   :  { %1633 = vmatprep.subr.bf16.mxu0 %v1985_v0  ;;  %1652 = vmatpush3.bf16.msra.mxu1 %v1809_v37 }
  0x67   :  { %1653 = vmatprep.subr.bf16.mxu1 %v1985_v0 }
  0x68   :  { %1598 = vmatmul.mubr.bf16.gmra.mrb[8].mxu0 %v1799_v27  ;;  %v1820_v27 = vld [vmem:[#allocation9 + $0x30] sm:$0xff]  }
  0x69   :  { %1634 = vmatpush3.bf16.msra.mxu0 %v1800_v28  ;;  %1601 = vmatprep.mubr.bf16.mxu0 %v1801_v29  ;;  %v1821_v28 = vld [vmem:[#allocation9 + $0x38] sm:$0xff]   ;;  %v1822_v29 = vld [vmem:[#allocation9] sm:$0xff]  }
  0x6a   :  { %1635 = vmatprep.subr.bf16.mxu0 %v1985_v0  ;;  %1654 = vmatpush3.bf16.msra.mxu1 %v1810_v6 }
  0x6b   :  { %1655 = vmatprep.subr.bf16.mxu1 %v1985_v0 }
  0x6d   :  { %1636 = vmatpush3.bf16.msra.mxu0 %v1802_v30  ;;  %v1823_v30 = vld [vmem:[#allocation9 + $0x8] sm:$0xff]  }
  0x6e   :  { %1637 = vmatprep.subr.bf16.mxu0 %v1985_v0  ;;  %1656 = vmatpush3.bf16.msra.mxu1 %v1811_v7 }
  0x6f   :  { %1657 = vmatprep.subr.bf16.mxu1 %v1985_v0 }
  0x70   :  { %1602 = vmatmul.mubr.bf16.gmra.mrb[12].mxu0 %v1803_v31  ;;  %v1824_v31 = vld [vmem:[#allocation9 + $0x10] sm:$0xff]  }
  0x71   :  { %1641 = vmatprep.mubr.msk.bf16.mxu0 %vm1986_vm0, %v1985_v0  ;;  %1638 = vmatpush3.bf16.msra.mxu0 %v1804_v32  ;;  %v1825_v32 = vld [vmem:[#allocation9 + $0x18] sm:$0xff]  }
  0x72   :  { %1639 = vmatprep.subr.bf16.mxu0 %v1985_v0  ;;  %1658 = vmatpush3.bf16.msra.mxu1 %v1812_v8 }
  0x73   :  { %1659 = vmatprep.subr.bf16.mxu1 %v1985_v0 }
  0x75   :  { %1640 = vmatpush3.bf16.msra.mxu0 %v1805_v33 }
  0x76   :  { %1665 = vmatprep.subr.bf16.mxu0 %v1985_v0  ;;  %1660 = vmatpush3.bf16.msra.mxu1 %v1813_v9 }
  0x77   :  { %1685 = vmatprep.subr.bf16.mxu1 %v1985_v0 }
 0x12a   :  { %v428_v40 = vpop.f32.mrb[0].mxu1 }
 0x12b   :  { %v1591_v39 = vpop.f32.mrb[0].mxu0  ;;  %v1623_v43 = vpop.f32.mrb[1].mxu1 }
 0x12c   :  { %v232_v41 = vpop.f32.mrb[1].mxu0  ;;  %v431_v46 = vpop.f32.mrb[2].mxu1  ;;  %v241_v14 = vadd.f32 %v1591_v39, %v2102_v38 }
 0x12d   :  { %v233_v44 = vadd.f32 %v2102_v38, %v232_v41  ;;  %v1592_v45 = vpop.f32.mrb[2].mxu0  ;;  %v1624_v48 = vpop.f32.mrb[3].mxu1 }
 0x12e   :  { %v235_v47 = vpop.f32.mrb[3].mxu0  ;;  %v244_v16 = vadd.f32 %v1592_v45, %v2102_v38  ;;  %v1826_v45 = vld [vmem:[#allocation9 + $0x20] sm:$0xff]   ;;  %v1829_v48 = vld [vmem:[#allocation9 + $0x38] sm:$0xff]  }
 0x12f   :  { %v324_v49 = vsub.f32 %v233_v44, %v1348_v42  ;;  %v236_v50 = vadd.f32 %v2102_v38, %v235_v47  ;;  %v1828_v47 = vld [vmem:[#allocation9 + $0x30] sm:$0xff]  }
 0x131   :  { %v437_v51 = vadd.f32 %v428_v40, %v324_v49  ;;  %v325_v52 = vsub.f32 %v236_v50, %v1348_v42  ;;  %v1830_v49 = vld [vmem:[#allocation9] sm:$0xff]   ;;  %v1831_v50 = vld [vmem:[#allocation9 + $0x8] sm:$0xff]  }
 0x133   :  { %v438_v53 = vadd.f32 %v431_v46, %v325_v52  ;;  %v2109_v54 = vpop.f32.mrb[4].mxu0  ;;  %1854 = vtanh.f32 %v437_v51  ;;  %v1827_v46 = vld [vmem:[#allocation9 + $0x28] sm:$0xff]   ;;  %v1832_v51 = vld [vmem:[#allocation9 + $0x10] sm:$0xff]   ;;  %v1833_v52 = vld [vmem:[#allocation9 + $0x18] sm:$0xff]  }
 0x134   :  { %v2111_v55 = vpop.f32.mrb[5].mxu0 }
 0x135   :  { %1856 = vtanh.f32 %v438_v53  ;;  %v2113_v56 = vpop.f32.mrb[6].mxu0  ;;  %v249_v33 = vadd.f32 %v2102_v38, %v2111_v55  ;;  %v257_v53 = vadd.f32 %v2109_v54, %v2102_v38  ;;  %v1834_v54 = vld [vmem:[#allocation9 + $0x20] sm:$0xff]  }
 0x136   :  { %v2115_v57 = vpop.f32.mrb[7].mxu0 }
 0x137   :  { %v252_v35 = vadd.f32 %v2102_v38, %v2115_v57  ;;  %v260_v57 = vadd.f32 %v2113_v56, %v2102_v38  ;;  %v1835_v56 = vld [vmem:[#allocation9 + $0x28] sm:$0xff]  }
 0x13b   :  { %v2119_v61 = vpop.f32.mrb[8].mxu0 }
 0x13c   :  { %v2121_v62 = vpop.f32.mrb[9].mxu0 }
 0x13d   :  { %v1855_v58 = vpop.eup %1854  ;;  %v2123_v63 = vpop.f32.mrb[10].mxu0 }
 0x13e   :  { %v2125_v1 = vpop.f32.mrb[11].mxu0 }
 0x13f   :  { %v1857_v59 = vpop.eup %1856 }
 0x140   :  { %v441_v60 = vpack.c.bf16 %v1857_v59, %v1855_v58 }
 0x142   :  { %1449 = vst [vmem:[#allocation10] sm:$0xff] %v441_v60   ;;  %1642 = vmatmul.mubr.bf16.vlgmr.msra.gmra.mrb[16].mxu0 %v441_v60 }
 0x143   :  { %1681 = vmatprep.mubr.msk.bf16.mxu0 %vm1986_vm0, %v1985_v0  ;;  %v2127_v2 = vpop.f32.mrb[12].mxu0  ;;  %1666 = vmatpush3.bf16.msra.mxu0 %v1814_v10 }
 0x144   :  { %v2129_v3 = vpop.f32.mrb[13].mxu0  ;;  %1667 = vmatprep.subr.bf16.mxu0 %v1985_v0 }
 0x145   :  { %v2131_v4 = vpop.f32.mrb[14].mxu0 }
 0x146   :  { %v2133_v5 = vpop.f32.mrb[15].mxu0 }
 0x147   :  { %1668 = vmatpush3.bf16.msra.mxu0 %v1815_v11  ;;  %v1836_v11 = vld [vmem:[#allocation9 + $0x30] sm:$0xff]  }
 0x148   :  { %1669 = vmatprep.subr.bf16.mxu0 %v1985_v0 }
 0x14b   :  { %1670 = vmatpush3.bf16.msra.mxu0 %v1816_v12  ;;  %v1837_v12 = vld [vmem:[#allocation9 + $0x38] sm:$0xff]  }
 0x14c   :  { %1671 = vmatprep.subr.bf16.mxu0 %v1985_v0 }
 0x14f   :  { %1672 = vmatpush3.bf16.msra.mxu0 %v1817_v13  ;;  %v1838_v13 = vld [vmem:[#allocation9] sm:$0xff]  }
 0x150   :  { %1673 = vmatprep.subr.bf16.mxu0 %v1985_v0 }
 0x153   :  { %1674 = vmatpush3.bf16.msra.mxu0 %v1818_v25 }
 0x154   :  { %1675 = vmatprep.subr.bf16.mxu0 %v1985_v0 }
 0x157   :  { %1676 = vmatpush3.bf16.msra.mxu0 %v1819_v26 }
 0x158   :  { %1677 = vmatprep.subr.bf16.mxu0 %v1985_v0 }
 0x15b   :  { %1678 = vmatpush3.bf16.msra.mxu0 %v1820_v27 }
 0x15c   :  { %1679 = vmatprep.subr.bf16.mxu0 %v1985_v0 }
 0x15f   :  { %1680 = vmatpush3.bf16.msra.mxu0 %v1821_v28  ;;  %v1844_v28 = vld [vmem:[#allocation9 + $0x30] sm:$0xff]  }
 0x160   :  { %1705 = vmatprep.subr.bf16.mxu0 %v1985_v0 }
 0x215   :  { %v549_v15 = vpop.f32.mrb[16].mxu0 }
 0x216   :  { %v559_v17 = vadd.f32 %v549_v15, %v241_v14  ;;  %v1643_v18 = vpop.f32.mrb[17].mxu0  ;;  %v1839_v14 = vld [vmem:[#allocation9 + $0x8] sm:$0xff]   ;;  %v1840_v15 = vld [vmem:[#allocation9 + $0x10] sm:$0xff]  }
 0x217   :  { %v552_v19 = vpop.f32.mrb[18].mxu0 }
 0x218   :  { %v560_v20 = vadd.f32 %v552_v19, %v244_v16  ;;  %v1644_v21 = vpop.f32.mrb[19].mxu0  ;;  %1858 = vtanh.f32 %v559_v17  ;;  %v1841_v16 = vld [vmem:[#allocation9 + $0x18] sm:$0xff]   ;;  %v265_v17 = vadd.f32 %v2102_v38, %v2121_v62  ;;  %v268_v19 = vadd.f32 %v2102_v38, %v2125_v1  ;;  %v1842_v62 = vld [vmem:[#allocation9 + $0x20] sm:$0xff]   ;;  %v1843_v1 = vld [vmem:[#allocation9 + $0x28] sm:$0xff]  }
 0x21a   :  { %1860 = vtanh.f32 %v560_v20 }
 0x222   :  { %v1859_v22 = vpop.eup %1858 }
 0x224   :  { %v1861_v23 = vpop.eup %1860 }
 0x225   :  { %v563_v24 = vpack.c.bf16 %v1861_v23, %v1859_v22 }
 0x227   :  { %1454 = vst [vmem:[#allocation10 + $0x8] sm:$0xff] %v563_v24   ;;  %1662 = vmatmul.mubr.bf16.vlgmr.msra.gmra.mrb[4].mxu1 %v563_v24 }
 0x228   :  { %1701 = vmatprep.mubr.msk.bf16.mxu1 %vm1986_vm0, %v1985_v0  ;;  %1686 = vmatpush3.bf16.msra.mxu1 %v1822_v29  ;;  %v1845_v29 = vld [vmem:[#allocation9 + $0x38] sm:$0xff]  }
 0x229   :  { %1687 = vmatprep.subr.bf16.mxu1 %v1985_v0 }
 0x22c   :  { %1688 = vmatpush3.bf16.msra.mxu1 %v1823_v30  ;;  %v1846_v30 = vld [vmem:[#allocation9] sm:$0xff]  }
 0x22d   :  { %1689 = vmatprep.subr.bf16.mxu1 %v1985_v0 }
 0x230   :  { %1690 = vmatpush3.bf16.msra.mxu1 %v1824_v31  ;;  %v1847_v31 = vld [vmem:[#allocation9 + $0x8] sm:$0xff]  }
 0x231   :  { %1691 = vmatprep.subr.bf16.mxu1 %v1985_v0 }
 0x234   :  { %1692 = vmatpush3.bf16.msra.mxu1 %v1825_v32  ;;  %v1848_v32 = vld [vmem:[#allocation9 + $0x10] sm:$0xff]  }
 0x235   :  { %1693 = vmatprep.subr.bf16.mxu1 %v1985_v0 }
 0x238   :  { %1694 = vmatpush3.bf16.msra.mxu1 %v1826_v45 }
 0x239   :  { %1695 = vmatprep.subr.bf16.mxu1 %v1985_v0 }
 0x23c   :  { %1696 = vmatpush3.bf16.msra.mxu1 %v1827_v46  ;;  %v1850_v46 = vld [vmem:[#allocation9 + $0x20] sm:$0xff]  }
 0x23d   :  { %1697 = vmatprep.subr.bf16.mxu1 %v1985_v0 }
 0x240   :  { %1698 = vmatpush3.bf16.msra.mxu1 %v1828_v47  ;;  %v1852_v47 = vld [vmem:[#allocation9 + $0x30] sm:$0xff]  }
 0x241   :  { %1699 = vmatprep.subr.bf16.mxu1 %v1985_v0 }
 0x244   :  { %1700 = vmatpush3.bf16.msra.mxu1 %v1829_v48  ;;  %v281_v48 = vadd.f32 %v2102_v38, %v2129_v3 }
 0x245   :  { %1725 = vmatprep.subr.bf16.mxu1 %v1985_v0 }
 0x2fa   :  { %v672_v34 = vpop.f32.mrb[4].mxu1 }
 0x2fb   :  { %v682_v36 = vadd.f32 %v672_v34, %v249_v33  ;;  %v1663_v37 = vpop.f32.mrb[5].mxu1  ;;  %v1849_v33 = vld [vmem:[#allocation9 + $0x18] sm:$0xff]   ;;  %v273_v34 = vadd.f32 %v2119_v61, %v2102_v38  ;;  %v1851_v61 = vld [vmem:[#allocation9 + $0x28] sm:$0xff]  }
 0x2fc   :  { %v675_v39 = vpop.f32.mrb[6].mxu1 }
 0x2fd   :  { %v683_v40 = vadd.f32 %v675_v39, %v252_v35  ;;  %v1664_v41 = vpop.f32.mrb[7].mxu1  ;;  %1862 = vtanh.f32 %v682_v36  ;;  %v276_v36 = vadd.f32 %v2123_v63, %v2102_v38  ;;  %v1853_v63 = vld [vmem:[#allocation9 + $0x38] sm:$0xff]  }
 0x2ff   :  { %1864 = vtanh.f32 %v683_v40 }
 0x307   :  { %v1863_v42 = vpop.eup %1862 }
 0x309   :  { %v1865_v43 = vpop.eup %1864 }
 0x30a   :  { %v686_v44 = vpack.c.bf16 %v1865_v43, %v1863_v42 }
 0x30c   :  { %1459 = vst [vmem:[#allocation10 + $0x10] sm:$0xff] %v686_v44   ;;  %1682 = vmatmul.mubr.bf16.vlgmr.msra.gmra.mrb[20].mxu0 %v686_v44 }
 0x30d   :  { %1721 = vmatprep.mubr.msk.bf16.mxu0 %vm1986_vm0, %v1985_v0  ;;  %1706 = vmatpush3.bf16.msra.mxu0 %v1830_v49 }
 0x30e   :  { %1707 = vmatprep.subr.bf16.mxu0 %v1985_v0 }
 0x311   :  { %1708 = vmatpush3.bf16.msra.mxu0 %v1831_v50  ;;  %v284_v50 = vadd.f32 %v2102_v38, %v2133_v5 }
 0x312   :  { %1709 = vmatprep.subr.bf16.mxu0 %v1985_v0 }
 0x315   :  { %1710 = vmatpush3.bf16.msra.mxu0 %v1832_v51 }
 0x316   :  { %1711 = vmatprep.subr.bf16.mxu0 %v1985_v0 }
 0x319   :  { %1712 = vmatpush3.bf16.msra.mxu0 %v1833_v52 }
 0x31a   :  { %1713 = vmatprep.subr.bf16.mxu0 %v1985_v0 }
 0x31d   :  { %1714 = vmatpush3.bf16.msra.mxu0 %v1834_v54 }
 0x31e   :  { %1715 = vmatprep.subr.bf16.mxu0 %v1985_v0 }
 0x321   :  { %1716 = vmatpush3.bf16.msra.mxu0 %v1835_v56 }
 0x322   :  { %1717 = vmatprep.subr.bf16.mxu0 %v1985_v0 }
 0x325   :  { %1718 = vmatpush3.bf16.msra.mxu0 %v1836_v11 }
 0x326   :  { %1719 = vmatprep.subr.bf16.mxu0 %v1985_v0 }
 0x329   :  { %1720 = vmatpush3.bf16.msra.mxu0 %v1837_v12 }
 0x32a   :  { %1745 = vmatprep.subr.bf16.mxu0 %v1985_v0 }
 0x3df   :  { %v795_v55 = vpop.f32.mrb[20].mxu0 }
 0x3e0   :  { %v805_v58 = vadd.f32 %v795_v55, %v257_v53  ;;  %v1683_v59 = vpop.f32.mrb[21].mxu0 }
 0x3e1   :  { %v798_v60 = vpop.f32.mrb[22].mxu0 }
 0x3e2   :  { %v806_v6 = vadd.f32 %v798_v60, %v260_v57  ;;  %v1684_v7 = vpop.f32.mrb[23].mxu0  ;;  %1866 = vtanh.f32 %v805_v58 }
 0x3e4   :  { %1868 = vtanh.f32 %v806_v6  ;;  %v292_v6 = vadd.f32 %v2131_v4, %v2102_v38 }
 0x3ec   :  { %v1867_v8 = vpop.eup %1866 }
 0x3ee   :  { %v1869_v9 = vpop.eup %1868 }
 0x3ef   :  { %v809_v10 = vpack.c.bf16 %v1869_v9, %v1867_v8 }
 0x3f1   :  { %1464 = vst [vmem:[#allocation10 + $0x18] sm:$0xff] %v809_v10   ;;  %1702 = vmatmul.mubr.bf16.vlgmr.msra.gmra.mrb[8].mxu1 %v809_v10 }
 0x3f2   :  { %1741 = vmatprep.mubr.msk.bf16.mxu1 %vm1986_vm0, %v1985_v0  ;;  %1726 = vmatpush3.bf16.msra.mxu1 %v1838_v13 }
 0x3f3   :  { %1727 = vmatprep.subr.bf16.mxu1 %v1985_v0 }
 0x3f6   :  { %1728 = vmatpush3.bf16.msra.mxu1 %v1839_v14 }
 0x3f7   :  { %1729 = vmatprep.subr.bf16.mxu1 %v1985_v0 }
 0x3fa   :  { %1730 = vmatpush3.bf16.msra.mxu1 %v1840_v15 }
 0x3fb   :  { %1731 = vmatprep.subr.bf16.mxu1 %v1985_v0 }
 0x3fe   :  { %1732 = vmatpush3.bf16.msra.mxu1 %v1841_v16 }
 0x3ff   :  { %1733 = vmatprep.subr.bf16.mxu1 %v1985_v0 }
 0x402   :  { %1734 = vmatpush3.bf16.msra.mxu1 %v1842_v62 }
 0x403   :  { %1735 = vmatprep.subr.bf16.mxu1 %v1985_v0 }
 0x406   :  { %1736 = vmatpush3.bf16.msra.mxu1 %v1843_v1 }
 0x407   :  { %1737 = vmatprep.subr.bf16.mxu1 %v1985_v0 }
 0x40a   :  { %1738 = vmatpush3.bf16.msra.mxu1 %v1844_v28 }
 0x40b   :  { %1739 = vmatprep.subr.bf16.mxu1 %v1985_v0 }
 0x40e   :  { %1740 = vmatpush3.bf16.msra.mxu1 %v1845_v29 }
 0x4c4   :  { %v918_v18 = vpop.f32.mrb[8].mxu1 }
 0x4c5   :  { %v928_v20 = vadd.f32 %v918_v18, %v265_v17  ;;  %v1703_v21 = vpop.f32.mrb[9].mxu1 }
 0x4c6   :  { %v921_v22 = vpop.f32.mrb[10].mxu1 }
 0x4c7   :  { %v929_v23 = vadd.f32 %v921_v22, %v268_v19  ;;  %v1704_v24 = vpop.f32.mrb[11].mxu1  ;;  %1870 = vtanh.f32 %v928_v20 }
 0x4c9   :  { %1872 = vtanh.f32 %v929_v23 }
 0x4d1   :  { %v1871_v25 = vpop.eup %1870 }
 0x4d3   :  { %v1873_v26 = vpop.eup %1872 }
 0x4d4   :  { %v932_v27 = vpack.c.bf16 %v1873_v26, %v1871_v25 }
 0x4d6   :  { %1469 = vst [vmem:[#allocation10 + $0x20] sm:$0xff] %v932_v27   ;;  %1722 = vmatmul.mubr.bf16.vlgmr.msra.gmra.mrb[24].mxu0 %v932_v27 }
 0x4d7   :  { %1761 = vmatprep.mubr.msk.bf16.mxu0 %vm1986_vm0, %v1985_v0  ;;  %1746 = vmatpush3.bf16.msra.mxu0 %v1846_v30 }
 0x4d8   :  { %1747 = vmatprep.subr.bf16.mxu0 %v1985_v0 }
 0x4db   :  { %1748 = vmatpush3.bf16.msra.mxu0 %v1847_v31 }
 0x4dc   :  { %1749 = vmatprep.subr.bf16.mxu0 %v1985_v0 }
 0x4df   :  { %1750 = vmatpush3.bf16.msra.mxu0 %v1848_v32 }
 0x4e0   :  { %1751 = vmatprep.subr.bf16.mxu0 %v1985_v0 }
 0x4e3   :  { %1752 = vmatpush3.bf16.msra.mxu0 %v1849_v33 }
 0x4e4   :  { %1753 = vmatprep.subr.bf16.mxu0 %v1985_v0 }
 0x4e7   :  { %1754 = vmatpush3.bf16.msra.mxu0 %v1850_v46 }
 0x4e8   :  { %1755 = vmatprep.subr.bf16.mxu0 %v1985_v0 }
 0x4eb   :  { %1756 = vmatpush3.bf16.msra.mxu0 %v1851_v61 }
 0x4ec   :  { %1757 = vmatprep.subr.bf16.mxu0 %v1985_v0 }
 0x4ef   :  { %1758 = vmatpush3.bf16.msra.mxu0 %v1852_v47 }
 0x4f0   :  { %1759 = vmatprep.subr.bf16.mxu0 %v1985_v0  ;;  %v289_v0 = vadd.f32 %v2127_v2, %v2102_v38 }
 0x4f3   :  { %1760 = vmatpush3.bf16.msra.mxu0 %v1853_v63 }
 0x5a9   :  { %v1041_v35 = vpop.f32.mrb[24].mxu0 }
 0x5aa   :  { %v1051_v37 = vadd.f32 %v1041_v35, %v273_v34  ;;  %v1723_v39 = vpop.f32.mrb[25].mxu0 }
 0x5ab   :  { %v1044_v40 = vpop.f32.mrb[26].mxu0 }
 0x5ac   :  { %v1052_v41 = vadd.f32 %v1044_v40, %v276_v36  ;;  %v1724_v42 = vpop.f32.mrb[27].mxu0  ;;  %1874 = vtanh.f32 %v1051_v37 }
 0x5ae   :  { %1876 = vtanh.f32 %v1052_v41 }
 0x5b6   :  { %v1875_v43 = vpop.eup %1874 }
 0x5b8   :  { %v1877_v44 = vpop.eup %1876 }
 0x5b9   :  { %v1055_v45 = vpack.c.bf16 %v1877_v44, %v1875_v43 }
 0x5bb   :  { %1474 = vst [vmem:[#allocation10 + $0x28] sm:$0xff] %v1055_v45   ;;  %1742 = vmatmul.mubr.bf16.vlgmr.msra.gmra.mrb[12].mxu1 %v1055_v45 }
 0x68e   :  { %v1164_v49 = vpop.f32.mrb[12].mxu1 }
 0x68f   :  { %v1174_v51 = vadd.f32 %v1164_v49, %v281_v48  ;;  %v1743_v52 = vpop.f32.mrb[13].mxu1 }
 0x690   :  { %v1167_v53 = vpop.f32.mrb[14].mxu1 }
 0x691   :  { %v1175_v55 = vadd.f32 %v1167_v53, %v284_v50  ;;  %v1744_v57 = vpop.f32.mrb[15].mxu1  ;;  %1878 = vtanh.f32 %v1174_v51 }
 0x693   :  { %1880 = vtanh.f32 %v1175_v55 }
 0x69b   :  { %v1879_v58 = vpop.eup %1878 }
 0x69d   :  { %v1881_v59 = vpop.eup %1880 }
 0x69e   :  { %v1178_v60 = vpack.c.bf16 %v1881_v59, %v1879_v58 }
 0x6a0   :  { %1479 = vst [vmem:[#allocation10 + $0x30] sm:$0xff] %v1178_v60   ;;  %1762 = vmatmul.mubr.bf16.vlgmr.msra.gmra.mrb[28].mxu0 %v1178_v60 }
 0x773   :  { %v1287_v3 = vpop.f32.mrb[28].mxu0 }
 0x774   :  { %v1297_v5 = vadd.f32 %v1287_v3, %v289_v0  ;;  %v1763_v7 = vpop.f32.mrb[29].mxu0 }
 0x775   :  { %v1290_v8 = vpop.f32.mrb[30].mxu0 }
 0x776   :  { %v1298_v9 = vadd.f32 %v1290_v8, %v292_v6  ;;  %v1764_v10 = vpop.f32.mrb[31].mxu0  ;;  %1882 = vtanh.f32 %v1297_v5 }
 0x778   :  { %1884 = vtanh.f32 %v1298_v9 }
 0x780   :  { %v1883_v54 = vpop.eup %1882 }
 0x782   :  { %v1885_v56 = vpop.eup %1884 }
 0x783   :  { %v1301_v11 = vpack.c.bf16 %v1885_v56, %v1883_v54 }
 0x785   :  { %1484 = vst [vmem:[#allocation10 + $0x38] sm:$0xff] %v1301_v11  }
 0x786   :  { %1963 = shalt.err (!%p1960_p0)
}
 0x787   :  { %s1964_s12 = scalar_lea.hbm %s2231_s5, 1024 }
 0x788   :  { %p1965_p1 = scmp.ne.s32.totalorder %s2231_s5, %s1964_s12  ;;  %p1968_p2 = scmp.lt.u32.totalorder %s1964_s12, %s2231_s5 }
 0x78a   :  { %p1970_p3 = pnand %p1968_p2, %p1965_p1 }
 0x78c   :  { %1973 = shalt.err (!%p1970_p3)
}
 0x78d   :  { %1324 = dma.vmem_to_hbm [thread:$0]  %s1319_s4, 1024, %s2231_s5, [#allocation6], %s1982_s30, %s1982_s30, %s1983_s6  }
 0x78e   :  { %1978 = dma.done.wait [#allocation6], 1024  }
 0x78f   :  { %1979 = vsyncadd [#allocation6], 4294966272 }
 0x790   :  { %1328 = vsyncpa [#allocation5], 1 }
 0x791   :  { %1329 = vsyncpa [#allocation8], 1 }
 0x792   :  { %1330 = vsyncpa [#allocation6], 1 }

</bundles_post_ra>
